<compile_context>
chip_gen: v7x
topology: tpu7x:2x2x1
jax: 0.10.0
libtpu: 0.0.40
codegen_flags: <defaults>
</compile_context>

<pallas_src>
import functools

import jax
import jax.numpy as jnp
from jax.experimental import pallas as pl
from jax.experimental.pallas import tpu as pltpu


def _tv_kernel(img_ref, out_ref, *, k_size: int, use_roll: bool):
    """Per-block partial sums of squared finite differences.

    img_ref: VMEM ref, block shape (TB, H, W)  (input dtype; cast to f32 here)
    out_ref: VMEM ref, block shape (1, 2, W) f32
             row 0 -> per-lane partial sum of (dH)^2
             row 1 -> per-lane partial sum of (dW)^2
    """
    # Single load of the tile, reused for both difference directions.
    x = img_ref[...].astype(jnp.float32)          # (TB, H, W)
    _, h, w = x.shape

    # ---- H direction (sublane axis): plain slice ----
    dh = x[:, k_size:, :] - x[:, :-k_size, :]     # (TB, H-k, W)
    ph = jnp.sum(jnp.sum(dh * dh, axis=0), axis=0, keepdims=True)        # (1, W)
    out_ref[0, 0:1, :] = ph

    # ---- W direction (lane axis) ----
    if use_roll:
        # XLU rotate keeps the layout 128-lane aligned; mask the wrapped lanes.
        shift = w - k_size
        x_r = pltpu.roll(x, shift, 2)             # x_r[..., i] = x[..., (i +/- k) % w]
        lane = jax.lax.broadcasted_iota(jnp.int32, (h, w), 1)
        lane_r = pltpu.roll(lane, shift, 1)
        # Mask built from the rolled iota: valid lanes are exactly the
        # non-wrapping pairs, whichever direction the rotate convention uses.
        valid = jnp.abs(lane_r - lane) == k_size                          # (H, W)
        dw = jnp.where(valid[None, :, :], x_r - x, 0.0)                   # (TB, H, W)
        pw = jnp.sum(jnp.sum(dw * dw, axis=0), axis=0, keepdims=True)     # (1, W)
        out_ref[0, 1:2, :] = pw
    else:
        dw = x[:, :, k_size:] - x[:, :, :-k_size]                         # (TB, H, W-k)
        pw = jnp.sum(jnp.sum(dw * dw, axis=0), axis=0, keepdims=True)     # (1, W-k)
        out_ref[0, 1:2, :] = jnp.zeros((1, w), jnp.float32)
        out_ref[0, 1:2, : w - k_size] = pw


def variation_loss(image: jax.Array, k_size: int, *, block_planes=None) -> jax.Array:
    """Pallas implementation of VariationLoss.forward (NCHW input)."""
    b, c, h, w = image.shape
    assert 0 < k_size < h and k_size < w, "k_size must be smaller than spatial dims"

    n_planes = b * c
    planes = image.reshape(n_planes, h, w)        # keep HBM dtype (no pre-cast)

    # ~2 MiB (f32-equivalent) per input block: big enough to reach ~85% of the
    # HBM roofline, small enough to double-buffer comfortably on v7x (64 MiB VMEM).
    if block_planes is None:
        target_bytes = 2 * 1024 * 1024
        block_planes = max(1, min(n_planes, target_bytes // (h * w * 4)))
    tb = int(block_planes)
    num_blocks = (n_planes + tb - 1) // tb
    padded = num_blocks * tb
    if padded != n_planes:
        # Zero planes contribute exactly 0 to both sums -> safe padding.
        pad = jnp.zeros((padded - n_planes, h, w), dtype=planes.dtype)
        planes = jnp.concatenate([planes, pad], axis=0)

    # TODO(synk): for very large single planes (e.g. f32 4K frames) add an
    # H-tiling grid axis with a k_size-row halo so one block stays < ~8 MiB.

    use_roll = (w % 128 == 0) and (2 * k_size != w)

    partials = pl.pallas_call(
        functools.partial(_tv_kernel, k_size=k_size, use_roll=use_roll),
        out_shape=jax.ShapeDtypeStruct((num_blocks, 2, w), jnp.float32),
        grid_spec=pltpu.PrefetchScalarGridSpec(
            num_scalar_prefetch=0,
            grid=(num_blocks,),
            in_specs=[pl.BlockSpec((tb, h, w), lambda i: (i, 0, 0))],
            out_specs=pl.BlockSpec((1, 2, w), lambda i: (i, 0, 0)),
        ),
        compiler_params=pltpu.CompilerParams(
            # Independent per-block partials -> grid shards across both TCs on v7x.
            dimension_semantics=("parallel",),
            # Headroom above the 32 MiB default scoped limit (v6e feedback);
            # actual usage with the default ~2 MiB blocks is far lower.
            vmem_limit_bytes=64 * 1024 * 1024,
        ),
    )(planes)

    sum_h = jnp.sum(partials[:, 0, :])
    sum_w = jnp.sum(partials[:, 1, :])
    n_h = n_planes * (h - k_size) * w
    n_w = n_planes * h * (w - k_size)
    tv_h = sum_h / jnp.float32(n_h)
    tv_w = sum_w / jnp.float32(n_w)
    # Always return float32 (mean-based scalar loss).
    return (tv_h + tv_w) / jnp.float32(3 * h * w)


def _reference(image, k_size):
    img = image.astype(jnp.float32)
    tv_h = jnp.mean((img[:, :, k_size:, :] - img[:, :, :-k_size, :]) ** 2)
    tv_w = jnp.mean((img[:, :, :, k_size:] - img[:, :, :, :-k_size]) ** 2)
    h, w = image.shape[2], image.shape[3]
    return (tv_h + tv_w) / (3 * h * w)


if __name__ == "__main__":
    key = jax.random.PRNGKey(0)

    # Main case (shape implied by the module's usage).
    b, c, h, w = 2, 4, 16, 16
    k_size = 1
    image = jax.random.normal(key, (b, c, h, w), dtype=jnp.float32)
    loss = jax.block_until_ready(variation_loss(image, k_size))
    ref = _reference(image, k_size)
    assert jnp.allclose(loss, ref, rtol=1e-4, atol=1e-6), (loss, ref)

    k1, k2 = jax.random.split(key)

    # Multi-block + zero-padding path (3 parallel grid steps over 5 planes), k=2.
    img2 = jax.random.normal(k1, (1, 5, 24, 48), dtype=jnp.float32)
    loss2 = jax.block_until_ready(variation_loss(img2, 2, block_planes=2))
    ref2 = _reference(img2, 2)
    assert jnp.allclose(loss2, ref2, rtol=1e-4, atol=1e-6), (loss2, ref2)

    # Lane-aligned width (w = 128) -> exercises the pltpu.roll path.
    img3 = jax.random.normal(k2, (1, 3, 16, 128), dtype=jnp.float32)
    loss3 = jax.block_until_ready(variation_loss(img3, 1, block_planes=2))
    ref3 = _reference(img3, 1)
    assert jnp.allclose(loss3, ref3, rtol=1e-4, atol=1e-6), (loss3, ref3)

    print("KERNEL_OK")
</pallas_src>

<mosaic_0001>
module attributes {stable_mosaic.version = 11 : i64} {
  func.func @_tv_kernel(%arg0: i32, %arg1: memref<8x16x16xf32, #tpu.memory_space<vmem>>, %arg2: memref<1x2x16xf32, #tpu.memory_space<vmem>>) attributes {dimension_semantics = [#tpu.dimension_semantics<parallel>], iteration_bounds = array<i64: 1>, scalar_prefetch = 0 : i64, scratch_operands = 0 : i64, tpu.core_type = #tpu.core_type<tc>, window_params = [{transform_indices = @transform_0, window_bounds = array<i64: 8, 16, 16>}, {transform_indices = @transform_1, window_bounds = array<i64: 1, 2, 16>}]} {
    %c0 = arith.constant 0 : index
    %c0_0 = arith.constant 0 : index
    %c0_1 = arith.constant 0 : index
    %0 = vector.load %arg1[%c0, %c0_0, %c0_1] : memref<8x16x16xf32, #tpu.memory_space<vmem>>, vector<8x16x16xf32>
    %1 = vector.extract_strided_slice %0 {offsets = [0, 1, 0], sizes = [8, 15, 16], strides = [1, 1, 1]} : vector<8x16x16xf32> to vector<8x15x16xf32>
    %2 = vector.extract_strided_slice %0 {offsets = [0, 0, 0], sizes = [8, 15, 16], strides = [1, 1, 1]} : vector<8x16x16xf32> to vector<8x15x16xf32>
    %3 = arith.subf %1, %2 : vector<8x15x16xf32>
    %4 = arith.mulf %3, %3 : vector<8x15x16xf32>
    %cst = arith.constant dense<0.000000e+00> : vector<15x16xf32>
    %5 = vector.multi_reduction <add>, %4, %cst [0] : vector<8x15x16xf32> to vector<15x16xf32>
    %cst_2 = arith.constant dense<0.000000e+00> : vector<16xf32>
    %6 = vector.multi_reduction <add>, %5, %cst_2 [0] : vector<15x16xf32> to vector<16xf32>
    %7 = vector.shape_cast %6 : vector<16xf32> to vector<1x16xf32>
    %c0_3 = arith.constant 0 : index
    %c0_4 = arith.constant 0 : index
    %c0_5 = arith.constant 0 : index
    %8 = vector.load %arg2[%c0_3, %c0_4, %c0_5] : memref<1x2x16xf32, #tpu.memory_space<vmem>>, vector<1x1x16xf32>
    %9 = vector.shape_cast %8 : vector<1x1x16xf32> to vector<1x16xf32>
    %10 = vector.shape_cast %7 : vector<1x16xf32> to vector<1x1x16xf32>
    tpu.vector_store %arg2[%c0_3, %c0_4, %c0_5], %10 {strides = array<i32>} : memref<1x2x16xf32, #tpu.memory_space<vmem>>, vector<1x1x16xf32>,
    %11 = vector.extract_strided_slice %0 {offsets = [0, 0, 1], sizes = [8, 16, 15], strides = [1, 1, 1]} : vector<8x16x16xf32> to vector<8x16x15xf32>
    %12 = vector.extract_strided_slice %0 {offsets = [0, 0, 0], sizes = [8, 16, 15], strides = [1, 1, 1]} : vector<8x16x16xf32> to vector<8x16x15xf32>
    %13 = arith.subf %11, %12 : vector<8x16x15xf32>
    %14 = arith.mulf %13, %13 : vector<8x16x15xf32>
    %cst_6 = arith.constant dense<0.000000e+00> : vector<16x15xf32>
    %15 = vector.multi_reduction <add>, %14, %cst_6 [0] : vector<8x16x15xf32> to vector<16x15xf32>
    %cst_7 = arith.constant dense<0.000000e+00> : vector<15xf32>
    %16 = vector.multi_reduction <add>, %15, %cst_7 [0] : vector<16x15xf32> to vector<15xf32>
    %17 = vector.shape_cast %16 : vector<15xf32> to vector<1x15xf32>
    %cst_8 = arith.constant 0.000000e+00 : f32
    %18 = vector.broadcast %cst_8 : f32 to vector<1x16xf32>
    %c0_9 = arith.constant 0 : index
    %c1 = arith.constant 1 : index
    %c0_10 = arith.constant 0 : index
    %19 = vector.load %arg2[%c0_9, %c1, %c0_10] : memref<1x2x16xf32, #tpu.memory_space<vmem>>, vector<1x1x16xf32>
    %20 = vector.shape_cast %19 : vector<1x1x16xf32> to vector<1x16xf32>
    %21 = vector.shape_cast %18 : vector<1x16xf32> to vector<1x1x16xf32>
    tpu.vector_store %arg2[%c0_9, %c1, %c0_10], %21 {strides = array<i32>} : memref<1x2x16xf32, #tpu.memory_space<vmem>>, vector<1x1x16xf32>,
    %c0_11 = arith.constant 0 : index
    %c1_12 = arith.constant 1 : index
    %c0_13 = arith.constant 0 : index
    %22 = vector.load %arg2[%c0_11, %c1_12, %c0_13] : memref<1x2x16xf32, #tpu.memory_space<vmem>>, vector<1x1x15xf32>
    %23 = vector.shape_cast %22 : vector<1x1x15xf32> to vector<1x15xf32>
    %24 = vector.shape_cast %17 : vector<1x15xf32> to vector<1x1x15xf32>
    tpu.vector_store %arg2[%c0_11, %c1_12, %c0_13], %24 {strides = array<i32>} : memref<1x2x16xf32, #tpu.memory_space<vmem>>, vector<1x1x15xf32>,
    return
  }
  func.func @transform_0(%arg0: i32) -> (i32, i32, i32) {
    %c0_i32 = arith.constant 0 : i32
    %c0_i32_0 = arith.constant 0 : i32
    %c0_i32_1 = arith.constant 0 : i32
    return %arg0, %c0_i32, %c0_i32_0 : i32, i32, i32
  }
  func.func @transform_1(%arg0: i32) -> (i32, i32, i32) {
    %c0_i32 = arith.constant 0 : i32
    %c0_i32_0 = arith.constant 0 : i32
    %c0_i32_1 = arith.constant 0 : i32
    return %arg0, %c0_i32, %c0_i32_0 : i32, i32, i32
  }
}

</mosaic_0001>

<bundles_post_ra>
// kernel: tpu_custom_call.1
= control target key start
LH: loop header
LB: loop body
LE: loop exit
PB: predicated region body
PF: predicated region fallthrough
CT: control target
= control target key end

     0   :  { %6 = vsyncpa [#allocation3], 0  ;;  %s557_s0 = inlined_call_operand.hbm [shape: f32[8,16,16], index: 0, kind: input, shape index: {}]   ;;  %s558_s1 = inlined_call_operand.hbm [shape: f32[1,2,16], index: 1, kind: output, shape index: {}]  }
   0x1   :  { %7 = vsyncpa [#allocation4], 0  ;;  %s377_s6 = smov [#allocation2]   ;;  %s329_s10 = scalar_lea.hbm %s557_s0, 2048 }
   0x2   :  { %s13_s7 = sshll.u32 %s377_s6, 4  ;;  %p330_p0 = scmp.ne.s32.totalorder %s557_s0, %s329_s10  ;;  %s14_s7 = int_to_ptr.vmem [resolvable:$true] %s13_s7 }
   0x3   :  { %p333_p1 = scmp.lt.u32.totalorder %s329_s10, %s557_s0 }
   0x5   :  { %p335_p2 = pnand %p333_p1, %p330_p0 }
   0x7   :  { %338 = shalt.err (!%p335_p2)
}
   0x8   :  { %s339_s15 = scalar_lea.vmem %s14_s7, 2048  ;;  %p344_p4 = scmp.lt.s32.totalorder %s14_s7, %s14_s7 }
   0x9   :  { %p340_p3 = scmp.ne.s32.totalorder %s14_s7, %s339_s15  ;;  %p345_p5 = scmp.lt.s32.totalorder %s339_s15, %s339_s15 }
   0xb   :  { %p346_p6 = por %p345_p5, %p344_p4 }
   0xd   :  { %p347_p7 = pnand %p346_p6, %p340_p3 }
   0xf   :  { %350 = shalt.err (!%p347_p7)
}
  0x10   :  { %s378_s16 = smov 128   ;;  %s379_s17 = smov 8  }
  0x11   :  { %19 = dma.hbm_to_vmem [thread:$0]  %s557_s0, 2048, %s14_s7, [#allocation3], %s378_s16, %s378_s16, %s379_s17  }
  0x12   :  { %373 = dma.done.wait [#allocation3], 2048  }
  0x13   :  { %374 = vsyncadd [#allocation3], 4294965248  ;;  %v406_v0 = vld [vmem:[#allocation2 + $0x10] sm:$0xff]  ;;  %v408_v1 = vld [vmem:[#allocation2] sm:$0xff]  ;;  %s380_s20 = smov 1   ;;  %vm55_vm0 = vcmask 1040384  }
  0x14   :  { %184 = vrot.lane.b32.xlu1 %v406_v0, %s380_s20  ;;  %180 = vrot.lane.b32.xlu0 %v408_v1, %s380_s20  ;;  %v412_v2 = vld [vmem:[#allocation2 + $0x18] sm:$0xff]  ;;  %v414_v3 = vld [vmem:[#allocation2 + $0x8] sm:$0xff]  ;;  %v420_v5 = vld [vmem:[#allocation2 + $0x20] sm:$0xff]  ;;  %v59_v16 = vrot.slane %v406_v0, 7  ;;  %v56_v17 = vrot.slane %v408_v1, 7  ;;  %vm128_vm1 = vcmask 130049  }
  0x15   :  { %v418_v4 = vld [vmem:[#allocation2 + $0x28] sm:$0xff]  ;;  %v424_v6 = vld [vmem:[#allocation2 + $0x38] sm:$0xff]  ;;  %v426_v7 = vld [vmem:[#allocation2 + $0x30] sm:$0xff]  ;;  %v60_v18 = vrot.slane %v412_v2, 7  ;;  %v57_v19 = vrot.slane %v414_v3, 7  ;;  %v62_v21 = vrot.slane %v420_v5, 7 }
  0x16   :  { %v430_v8 = vld [vmem:[#allocation2 + $0x48] sm:$0xff]  ;;  %v432_v9 = vld [vmem:[#allocation2 + $0x40] sm:$0xff]  ;;  %v436_v10 = vld [vmem:[#allocation2 + $0x58] sm:$0xff]  ;;  %v63_v20 = vrot.slane %v418_v4, 7  ;;  %v98_v24 = vsub.f32 %v406_v0, %v59_v16  ;;  %v96_v25 = vsub.f32 %v408_v1, %v56_v17  ;;  %v66_v29 = vrot.slane %v424_v6, 7  ;;  %s382_s0 = smov 127  }
  0x17   :  { %v438_v11 = vld [vmem:[#allocation2 + $0x50] sm:$0xff]  ;;  %v442_v12 = vld [vmem:[#allocation2 + $0x68] sm:$0xff]  ;;  %v444_v13 = vld [vmem:[#allocation2 + $0x60] sm:$0xff]  ;;  %v61_v22 = vsel %vm55_vm0, %v59_v16, %v60_v18  ;;  %v58_v23 = vsel %vm55_vm0, %v56_v17, %v57_v19  ;;  %v65_v30 = vrot.slane %v426_v7, 7  ;;  %v100_v33 = vsub.f32 %v420_v5, %v62_v21  ;;  %s383_s21 = smov [#allocation5]  }
  0x18   :  { %186 = vrot.lane.b32.xlu1 %v412_v2, %s380_s20  ;;  %182 = vrot.lane.b32.xlu0 %v414_v3, %s380_s20  ;;  %v448_v14 = vld [vmem:[#allocation2 + $0x78] sm:$0xff]  ;;  %v450_v15 = vld [vmem:[#allocation2 + $0x70] sm:$0xff]  ;;  %v99_v26 = vsub.f32 %v412_v2, %v61_v22  ;;  %v97_v27 = vsub.f32 %v414_v3, %v58_v23  ;;  %v64_v28 = vsel %vm55_vm0, %v62_v21, %v63_v20  ;;  %vm144_vm2 = vcmask 130048   ;;  %s313_s22 = sshll.u32 %s383_s21, 4  ;;  %s314_s22 = int_to_ptr.vmem [resolvable:$true] %s313_s22 }
  0x19   :  { %v114_v31 = vmul.f32 %v98_v24, %v98_v24  ;;  %v112_v32 = vmul.f32 %v96_v25, %v96_v25  ;;  %v101_v34 = vsub.f32 %v418_v4, %v64_v28  ;;  %v67_v37 = vsel %vm55_vm0, %v65_v30, %v66_v29  ;;  %s351_s23 = scalar_lea.vmem %s314_s22, 32  ;;  %p356_p9 = scmp.lt.s32.totalorder %s314_s22, %s314_s22 }
  0x1a   :  { %v115_v35 = vmul.f32 %v99_v26, %v99_v26  ;;  %v113_v36 = vmul.f32 %v97_v27, %v97_v27  ;;  %v69_v38 = vrot.slane %v430_v8, 7  ;;  %v68_v39 = vrot.slane %v432_v9, 7  ;;  %p352_p8 = scmp.ne.s32.totalorder %s314_s22, %s351_s23  ;;  %p357_p10 = scmp.lt.s32.totalorder %s351_s23, %s351_s23 }
  0x1b   :  { %v130_v40 = vsel %vm128_vm1, %v114_v31, 0.0  ;;  %v129_v41 = vsel %vm128_vm1, %v112_v32, 0.0  ;;  %v116_v42 = vmul.f32 %v100_v33, %v100_v33  ;;  %v117_v43 = vmul.f32 %v101_v34, %v101_v34 }
  0x1c   :  { %190 = vrot.lane.b32.xlu1 %v418_v4, %s380_s20  ;;  %188 = vrot.lane.b32.xlu0 %v420_v5, %s380_s20  ;;  %v146_v44 = vsel %vm144_vm2, %v115_v35, 0.0  ;;  %v145_v45 = vsel %vm144_vm2, %v113_v36, 0.0  ;;  %v102_v46 = vsub.f32 %v426_v7, %v65_v30  ;;  %v103_v47 = vsub.f32 %v424_v6, %v67_v37  ;;  %p358_p11 = por %p357_p10, %p356_p9 }
  0x1d   :  { %v70_v48 = vsel %vm55_vm0, %v68_v39, %v69_v38  ;;  %v72_v49 = vrot.slane %v436_v10, 7  ;;  %v71_v50 = vrot.slane %v438_v11, 7  ;;  %v131_v51 = vadd.f32 %v130_v40, %v129_v41 }
  0x1e   :  { %v147_v52 = vadd.f32 %v146_v44, %v145_v45  ;;  %v132_v53 = vsel %vm128_vm1, %v116_v42, 0.0  ;;  %v148_v54 = vsel %vm144_vm2, %v117_v43, 0.0  ;;  %v118_v55 = vmul.f32 %v102_v46, %v102_v46  ;;  %p359_p12 = pnand %p358_p11, %p352_p8 }
  0x1f   :  { %v119_v56 = vmul.f32 %v103_v47, %v103_v47  ;;  %v104_v57 = vsub.f32 %v432_v9, %v68_v39  ;;  %v105_v58 = vsub.f32 %v430_v8, %v70_v48  ;;  %v73_v59 = vsel %vm55_vm0, %v71_v50, %v72_v49 }
  0x20   :  { %194 = vrot.lane.b32.xlu1 %v424_v6, %s380_s20  ;;  %192 = vrot.lane.b32.xlu0 %v426_v7, %s380_s20  ;;  %v75_v60 = vrot.slane %v442_v12, 7  ;;  %v74_v61 = vrot.slane %v444_v13, 7  ;;  %v133_v62 = vadd.f32 %v132_v53, %v131_v51  ;;  %v149_v63 = vadd.f32 %v148_v54, %v147_v52 }
  0x21   :  { %v134_v16 = vsel %vm128_vm1, %v118_v55, 0.0  ;;  %v150_v17 = vsel %vm144_vm2, %v119_v56, 0.0  ;;  %v120_v18 = vmul.f32 %v104_v57, %v104_v57  ;;  %v121_v19 = vmul.f32 %v105_v58, %v105_v58 }
  0x22   :  { %v106_v20 = vsub.f32 %v438_v11, %v71_v50  ;;  %v107_v21 = vsub.f32 %v436_v10, %v73_v59  ;;  %v78_v22 = vrot.slane %v448_v14, 7  ;;  %v77_v23 = vrot.slane %v450_v15, 7 }
  0x23   :  { %v76_v24 = vsel %vm55_vm0, %v74_v61, %v75_v60  ;;  %v135_v25 = vadd.f32 %v134_v16, %v133_v62  ;;  %v151_v26 = vadd.f32 %v150_v17, %v149_v63  ;;  %v136_v27 = vsel %vm128_vm1, %v120_v18, 0.0 }
  0x24   :  { %198 = vrot.lane.b32.xlu1 %v430_v8, %s380_s20  ;;  %196 = vrot.lane.b32.xlu0 %v432_v9, %s380_s20  ;;  %v152_v28 = vsel %vm144_vm2, %v121_v19, 0.0  ;;  %v108_v29 = vsub.f32 %v444_v13, %v74_v61  ;;  %v122_v30 = vmul.f32 %v106_v20, %v106_v20  ;;  %v123_v31 = vmul.f32 %v107_v21, %v107_v21 }
  0x25   :  { %v109_v32 = vsub.f32 %v442_v12, %v76_v24  ;;  %v79_v33 = vsel %vm55_vm0, %v77_v23, %v78_v22  ;;  %v137_v36 = vadd.f32 %v136_v27, %v135_v25  ;;  %v153_v37 = vadd.f32 %v152_v28, %v151_v26 }
  0x26   :  { %v110_v38 = vsub.f32 %v450_v15, %v77_v23  ;;  %v111_v39 = vsub.f32 %v448_v14, %v79_v33  ;;  %v138_v40 = vsel %vm128_vm1, %v122_v30, 0.0  ;;  %v154_v41 = vsel %vm144_vm2, %v123_v31, 0.0 }
  0x27   :  { %v124_v42 = vmul.f32 %v108_v29, %v108_v29  ;;  %v125_v43 = vmul.f32 %v109_v32, %v109_v32  ;;  %v139_v46 = vadd.f32 %v138_v40, %v137_v36  ;;  %v155_v47 = vadd.f32 %v154_v41, %v153_v37 }
  0x28   :  { %202 = vrot.lane.b32.xlu1 %v436_v10, %s380_s20  ;;  %200 = vrot.lane.b32.xlu0 %v438_v11, %s380_s20  ;;  %v126_v48 = vmul.f32 %v110_v38, %v110_v38  ;;  %v127_v49 = vmul.f32 %v111_v39, %v111_v39  ;;  %vm260_vm3 = vcmask 130056   ;;  %vm162_vm4 = vcmask 1046528  }
  0x29   :  { %v140_v50 = vsel %vm128_vm1, %v124_v42, 0.0  ;;  %v156_v51 = vsel %vm144_vm2, %v125_v43, 0.0  ;;  %vm169_vm5 = vcmask 129024   ;;  %vm178_vm6 = vcmask 122880  }
  0x2a   :  { %v141_v58 = vadd.f32 %v140_v50, %v139_v46  ;;  %v157_v59 = vadd.f32 %v156_v51, %v155_v47  ;;  %v142_v60 = vsel %vm128_vm1, %v126_v48, 0.0  ;;  %v158_v61 = vsel %vm144_vm2, %v127_v49, 0.0 }
  0x2b   :  { %vm305_vm7 = vcmask 114688  }
  0x2c   :  { %206 = vrot.lane.b32.xlu1 %v442_v12, %s380_s20  ;;  %204 = vrot.lane.b32.xlu0 %v444_v13, %s380_s20  ;;  %v143_v20 = vadd.f32 %v142_v60, %v141_v58  ;;  %v159_v21 = vadd.f32 %v158_v61, %v157_v59 }
  0x2e   :  { %v163_v30 = vrot.slane %v143_v20, 1  ;;  %v164_v37 = vrot.slane %v159_v21, 1 }
  0x30   :  { %210 = vrot.lane.b32.xlu1 %v448_v14, %s380_s20  ;;  %208 = vrot.lane.b32.xlu0 %v450_v15, %s380_s20 }
  0x86   :  { %v185_v34 = vpop.permute.xlu1 %184  ;;  %v181_v35 = vpop.permute.xlu0 %180 }
  0x87   :  { %v230_v52 = vsub.f32 %v406_v0, %v185_v34  ;;  %v228_v53 = vsub.f32 %v408_v1, %v181_v35 }
  0x89   :  { %v246_v62 = vmul.f32 %v230_v52, %v230_v52  ;;  %v244_v63 = vmul.f32 %v228_v53, %v228_v53 }
  0x8a   :  { %v187_v44 = vpop.permute.xlu1 %186  ;;  %v183_v45 = vpop.permute.xlu0 %182 }
  0x8b   :  { %v231_v56 = vsub.f32 %v412_v2, %v187_v44  ;;  %v229_v57 = vsub.f32 %v414_v3, %v183_v45  ;;  %v262_v22 = vsel %vm260_vm3, %v246_v62, 0.0  ;;  %v261_v23 = vsel %vm260_vm3, %v244_v63, 0.0 }
  0x8c   :  { %v263_v31 = vadd.f32 %v262_v22, %v261_v23  ;;  %v165_v44 = vsel %vm162_vm4, %v163_v30, %v164_v37  ;;  %v170_v45 = vsel %vm169_vm5, %v164_v37, 0.0 }
  0x8d   :  { %v247_v18 = vmul.f32 %v231_v56, %v231_v56  ;;  %v245_v19 = vmul.f32 %v229_v57, %v229_v57  ;;  %v168_v50 = vsel %vm144_vm2, %v165_v44, 0.0 }
  0x8e   :  { %v191_v54 = vpop.permute.xlu1 %190  ;;  %v189_v55 = vpop.permute.xlu0 %188 }
  0x8f   :  { %v233_v16 = vsub.f32 %v418_v4, %v191_v54  ;;  %v232_v0 = vsub.f32 %v420_v5, %v189_v55  ;;  %v277_v5 = vsel %vm260_vm3, %v247_v18, 0.0  ;;  %v276_v27 = vsel %vm260_vm3, %v245_v19, 0.0 }
  0x90   :  { %v278_v32 = vadd.f32 %v277_v5, %v276_v27  ;;  %v171_v55 = vadd.f32 %v170_v45, %v168_v50 }
  0x91   :  { %v249_v24 = vmul.f32 %v233_v16, %v233_v16  ;;  %v248_v25 = vmul.f32 %v232_v0, %v232_v0 }
  0x92   :  { %v195_v17 = vpop.permute.xlu1 %194  ;;  %v193_v1 = vpop.permute.xlu0 %192  ;;  %v172_v16 = vrot.slane %v171_v55, 4 }
  0x93   :  { %v235_v2 = vsub.f32 %v424_v6, %v195_v17  ;;  %v234_v3 = vsub.f32 %v426_v7, %v193_v1  ;;  %v279_v33 = vsel %vm260_vm3, %v249_v24, 0.0  ;;  %v264_v34 = vsel %vm260_vm3, %v248_v25, 0.0 }
  0x94   :  { %v280_v46 = vadd.f32 %v279_v33, %v278_v32  ;;  %v265_v47 = vadd.f32 %v264_v34, %v263_v31  ;;  %v173_v19 = vadd.f32 %v172_v16, %v171_v55 }
  0x95   :  { %v251_v29 = vmul.f32 %v235_v2, %v235_v2  ;;  %v250_v7 = vmul.f32 %v234_v3, %v234_v3 }
  0x96   :  { %v199_v4 = vpop.permute.xlu1 %198  ;;  %v197_v26 = vpop.permute.xlu0 %196  ;;  %v174_v22 = vrot.slane %v173_v19, 2 }
  0x97   :  { %v237_v28 = vsub.f32 %v430_v8, %v199_v4  ;;  %v236_v6 = vsub.f32 %v432_v9, %v197_v26  ;;  %v281_v9 = vsel %vm260_vm3, %v251_v29, 0.0  ;;  %v266_v41 = vsel %vm260_vm3, %v250_v7, 0.0 }
  0x98   :  { %v282_v53 = vadd.f32 %v281_v9, %v280_v46  ;;  %v267_v54 = vadd.f32 %v266_v41, %v265_v47  ;;  %v175_v26 = vadd.f32 %v174_v22, %v173_v19 }
  0x99   :  { %v253_v38 = vmul.f32 %v237_v28, %v237_v28  ;;  %v252_v39 = vmul.f32 %v236_v6, %v236_v6  ;;  %v381_v6 = vmov 0.0  }
  0x9a   :  { %v203_v35 = vpop.permute.xlu1 %202  ;;  %v201_v36 = vpop.permute.xlu0 %200  ;;  %300 = vst.msk [vmem:[#allocation5 + $0x1] sm:$0x1] %vm178_vm6, %v381_v6 }
  0x9b   :  { %v239_v40 = vsub.f32 %v436_v10, %v203_v35  ;;  %v238_v8 = vsub.f32 %v438_v11, %v201_v36  ;;  %v283_v10 = vsel %vm260_vm3, %v253_v38, 0.0  ;;  %v268_v11 = vsel %vm260_vm3, %v252_v39, 0.0 }
  0x9c   :  { %v284_v60 = vadd.f32 %v283_v10, %v282_v53  ;;  %v269_v61 = vadd.f32 %v268_v11, %v267_v54 }
  0x9d   :  { %v255_v42 = vmul.f32 %v239_v40, %v239_v40  ;;  %v254_v43 = vmul.f32 %v238_v8, %v238_v8 }
  0x9e   :  { %v207_v48 = vpop.permute.xlu1 %206  ;;  %v205_v49 = vpop.permute.xlu0 %204 }
  0x9f   :  { %v241_v51 = vsub.f32 %v442_v12, %v207_v48  ;;  %v240_v52 = vsub.f32 %v444_v13, %v205_v49  ;;  %v285_v56 = vsel %vm260_vm3, %v255_v42, 0.0  ;;  %v270_v57 = vsel %vm260_vm3, %v254_v43, 0.0 }
  0xa0   :  { %v286_v1 = vadd.f32 %v285_v56, %v284_v60  ;;  %v271_v18 = vadd.f32 %v270_v57, %v269_v61 }
  0xa1   :  { %v257_v58 = vmul.f32 %v241_v51, %v241_v51  ;;  %v256_v59 = vmul.f32 %v240_v52, %v240_v52 }
  0xa2   :  { %v211_v62 = vpop.permute.xlu1 %210  ;;  %v209_v63 = vpop.permute.xlu0 %208 }
  0xa3   :  { %v287_v0 = vsel %vm260_vm3, %v257_v58, 0.0  ;;  %v272_v12 = vsel %vm260_vm3, %v256_v59, 0.0  ;;  %v243_v13 = vsub.f32 %v448_v14, %v211_v62  ;;  %v242_v17 = vsub.f32 %v450_v15, %v209_v63 }
  0xa4   :  { %v288_v20 = vadd.f32 %v287_v0, %v286_v1  ;;  %v273_v21 = vadd.f32 %v272_v12, %v271_v18  ;;  %v176_v15 = vrot.slane %v175_v26, 1 }
  0xa5   :  { %v259_v2 = vmul.f32 %v243_v13, %v243_v13  ;;  %v258_v3 = vmul.f32 %v242_v17, %v242_v17 }
  0xa6   :  { %v177_v28 = vadd.f32 %v176_v15, %v175_v26 }
  0xa7   :  { %v289_v23 = vsel %vm260_vm3, %v259_v2, 0.0  ;;  %v274_v24 = vsel %vm260_vm3, %v258_v3, 0.0 }
  0xa8   :  { %v290_v25 = vadd.f32 %v289_v23, %v288_v20  ;;  %v275_v4 = vadd.f32 %v274_v24, %v273_v21  ;;  %179 = vst.msk [vmem:[#allocation5] sm:$0x1] %vm178_vm6, %v177_v28 }
  0xaa   :  { %v292_v5 = vsel %vm260_vm3, %v290_v25, 0.0  ;;  %v291_v14 = vsel %vm260_vm3, %v275_v4, 0.0 }
  0xab   :  { %v293_v27 = vadd.f32 %v292_v5, %v291_v14 }
  0xad   :  { %v294_v29 = vrot.slane %v293_v27, 4 }
  0xaf   :  { %v295_v7 = vadd.f32 %v294_v29, %v293_v27 }
  0xb1   :  { %v296_v30 = vrot.slane %v295_v7, 2 }
  0xb3   :  { %v297_v31 = vadd.f32 %v296_v30, %v295_v7 }
  0xb5   :  { %v298_v32 = vrot.slane %v297_v31, 1 }
  0xb7   :  { %v299_v33 = vadd.f32 %v298_v32, %v297_v31 }
  0xb9   :  { %302 = vrot.lane.b32.xlu0 %v299_v33, %s382_s0 }
 0x12b   :  { %v303_v34 = vpop.permute.xlu0 %302 }
 0x12c   :  { %306 = vst.msk [vmem:[#allocation5 + $0x1] sm:$0x1] %vm305_vm7, %v303_v34 }
 0x12d   :  { %362 = shalt.err (!%p359_p12)
}
 0x12e   :  { %s363_s26 = scalar_lea.hbm %s558_s1, 32 }
 0x12f   :  { %p364_p13 = scmp.ne.s32.totalorder %s558_s1, %s363_s26  ;;  %p367_p0 = scmp.lt.u32.totalorder %s363_s26, %s558_s1 }
 0x131   :  { %p369_p1 = pnand %p367_p0, %p364_p13 }
 0x133   :  { %372 = shalt.err (!%p369_p1)
}
 0x134   :  { %316 = dma.vmem_to_hbm [thread:$0]  %s314_s22, 32, %s558_s1, [#allocation4]  }
 0x135   :  { %375 = dma.done.wait [#allocation4], 32  }
 0x136   :  { %376 = vsyncadd [#allocation4], 4294967264 }
 0x137   :  { %320 = vsyncpa [#allocation3], 1 }
 0x138   :  { %321 = vsyncpa [#allocation4], 1 }

</bundles_post_ra>
